<compile_context>
chip_gen: v6e
topology: v6e:2x2x1
jax: 0.10.0
libtpu: 0.0.40
codegen_flags: <defaults>
</compile_context>

<pallas_src>
import jax
import jax.numpy as jnp
from jax.experimental import pallas as pl
from jax.experimental.pallas import tpu as pltpu


def _mish(v):
    # tanh(softplus(v)) == t / (t + 2)  with  t = e^v * (e^v + 2).
    # Clamp keeps exp finite; for v > 20 the factor is 1.0 to f32 precision.
    e = jnp.exp(jnp.minimum(v, 20.0))
    t = e * (e + 2.0)
    d = t + 2.0
    r = pl.reciprocal(d, approx=True)   # EUP slot (otherwise idle)
    r = r * (2.0 - d * r)               # one Newton step -> ~f32 accuracy
    return v * (t * r)


def _resblock_kernel_proj(x_ref, w_ref, o_ref):
    """channels != out_channels:  out = Mish( (W_res + W2@W1) @ Mish(x) )."""
    x = x_ref[...].astype(jnp.float32)            # (C, T), pixels in lanes
    w = w_ref[...]                                # (Cout, C), f32 or bf16
    mx = _mish(x)
    y = jnp.dot(w, mx.astype(w.dtype), preferred_element_type=jnp.float32)
    o_ref[...] = _mish(y).astype(o_ref.dtype)


def _resblock_kernel_identity(x_ref, w_ref, o_ref):
    """channels == out_channels:  out = Mish( x + (W2@W1) @ Mish(x) )."""
    x = x_ref[...].astype(jnp.float32)            # (C, T)
    w = w_ref[...]
    mx = _mish(x)
    blk = jnp.dot(w, mx.astype(w.dtype), preferred_element_type=jnp.float32)
    o_ref[...] = _mish(x + blk).astype(o_ref.dtype)


def _vmem_limit_bytes():
    """Generation-aware VMEM limit: half of physical, capped at 64 MiB."""
    try:
        cap = int(pltpu.get_tpu_info().vmem_capacity_bytes)
    except Exception:
        cap = 64 << 20                 # v7x-safe fallback
    return int(min(cap // 2, 64 << 20))  # 64 MiB on v5e/v6e, 32 MiB on v7x


def _pick_tile_hw(hw, n_batch, c, cout, w_bytes, vmem_limit):
    """Pixel-tile (multiple of 128) sized from payload target + VMEM budget."""
    hw_cap = -(-hw // 128) * 128                  # one block covers all pixels
    per_px_hbm = 4 * (c + cout)                   # f32 bytes streamed per pixel
    per_px_vmem = 4 * (3 * c + 4 * cout)          # 2x-buffered x/out + live temps
    budget = (vmem_limit * 3) // 4 - 2 * w_bytes  # weight is double-buffered
    t_cap = max(budget // per_px_vmem, 128)
    t = max(512, (4 << 20) // per_px_hbm)         # ~4 MiB x+out payload per step
    t = min(t, t_cap, hw_cap)
    t = max(128, (t // 128) * 128)
    # Megacore guard (v7x): keep >= ~8 grid steps so both TensorCores get work,
    # but never drop below ~2 MiB payload per step.
    t_floor = max(512, (((2 << 20) // per_px_hbm) // 128) * 128)
    while n_batch * (-(-hw // t)) < 8 and t > t_floor:
        t = max(t_floor, ((t // 2) // 128) * 128)
    return t


def resblock2d_pallas(x_nchw, w_res, w1, w2, *, tile_hw=None, matmul_dtype=None):
    """x_nchw: (N, C, H, W).

    Weights use the PyTorch 1x1-conv layout with the trailing (1, 1) squeezed:
      w_res: (Cout, C) or None (None when channels == out_channels),
      w1:    (Cout//2, C),    w2: (Cout, Cout//2).
    """
    N, C, H, W = x_nchw.shape
    Cout, Chid = w2.shape
    assert w1.shape == (Chid, C)
    HW = H * W

    # Exact weight fusion: no activation between conv1 and conv2.
    w_blk = jnp.dot(w2.astype(jnp.float32), w1.astype(jnp.float32),
                    precision=jax.lax.Precision.HIGHEST)          # (Cout, C)
    if w_res is not None:
        assert w_res.shape == (Cout, C)
        w_fused = w_res.astype(jnp.float32) + w_blk
        kernel = _resblock_kernel_proj
    else:
        assert C == Cout, "identity residual requires channels == out_channels"
        w_fused = w_blk
        kernel = _resblock_kernel_identity

    # bf16 matmul for large channel counts (MXU ~3x cheaper, halves weight VMEM);
    # f32 for tiny channels where MXU time is negligible anyway.
    if matmul_dtype is None:
        matmul_dtype = jnp.bfloat16 if min(C, Cout) >= 128 else jnp.float32
    w_fused = w_fused.astype(matmul_dtype)
    w_bytes = int(w_fused.size) * w_fused.dtype.itemsize

    vmem_limit = _vmem_limit_bytes()
    if tile_hw is None:
        tile_hw = _pick_tile_hw(HW, N, C, Cout, w_bytes, vmem_limit)
    n_tiles = pl.cdiv(HW, tile_hw)

    # NCHW viewed as (N, C, HW): pixels land in the lane dim, no transpose,
    # no pad -- the trailing partial block (if any) is masked by Pallas.
    x3 = x_nchw.reshape(N, C, HW)

    x_spec = pl.BlockSpec((None, C, tile_hw), lambda n, j: (n, 0, j))
    w_spec = pl.BlockSpec((Cout, C), lambda n, j: (0, 0))   # constant -> fetched once
    o_spec = pl.BlockSpec((None, Cout, tile_hw), lambda n, j: (n, 0, j))

    out3 = pl.pallas_call(
        kernel,
        out_shape=jax.ShapeDtypeStruct((N, Cout, HW), x_nchw.dtype),
        grid_spec=pltpu.PrefetchScalarGridSpec(
            num_scalar_prefetch=0,
            grid=(N, n_tiles),
            in_specs=[x_spec, w_spec],
            out_specs=o_spec),
        compiler_params=pltpu.CompilerParams(
            dimension_semantics=("parallel", "parallel"),
            vmem_limit_bytes=vmem_limit),
    )(x3, w_fused)

    return out3.reshape(N, Cout, H, W)


def resblock2d_ref(x_nchw, w_res, w1, w2):
    """Pure-JAX reference matching the PyTorch forward (no weight fusion)."""
    x = x_nchw.astype(jnp.float32)
    mish = lambda v: v * jnp.tanh(jax.nn.softplus(v))
    conv = lambda t, w: jnp.einsum("nchw,oc->nohw", t, w.astype(jnp.float32),
                                   precision=jax.lax.Precision.HIGHEST)
    mx = mish(x)
    residual = conv(mx, w_res) if w_res is not None else x
    blk = conv(conv(mx, w1), w2)
    return mish(residual + blk).astype(x_nchw.dtype)


if __name__ == "__main__":
    key = jax.random.PRNGKey(0)

    def make_weights(k, c, cout):
        chid = cout // 2
        k1, k2, k3 = jax.random.split(k, 3)
        s = lambda f: 1.0 / jnp.sqrt(f)
        w_res = jax.random.normal(k1, (cout, c), jnp.float32) * s(c)
        w1 = jax.random.normal(k2, (chid, c), jnp.float32) * s(c)
        w2 = jax.random.normal(k3, (cout, chid), jnp.float32) * s(chid)
        return w_res, w1, w2

    def check(name, x, w_res, w1, w2, atol, rtol):
        out = jax.block_until_ready(resblock2d_pallas(x, w_res, w1, w2))
        ref = resblock2d_ref(x, w_res, w1, w2)
        assert out.shape == ref.shape, (name, out.shape, ref.shape)
        err = float(jnp.max(jnp.abs(out - ref)))
        assert jnp.allclose(out, ref, atol=atol, rtol=rtol), (name, err)

    # 1) projection residual (channels != out_channels)
    k0, kw = jax.random.split(key)
    x = jax.random.normal(k0, (2, 4, 16, 16), jnp.float32)
    w_res, w1, w2 = make_weights(kw, 4, 8)
    check("proj", x, w_res, w1, w2, 2e-4, 2e-4)

    # 2) identity residual (channels == out_channels)
    _, w1i, w2i = make_weights(kw, 8, 8)
    xi = jax.random.normal(k0, (2, 8, 16, 16), jnp.float32)
    check("identity", xi, None, w1i, w2i, 2e-4, 2e-4)

    # 3) pixel count not a multiple of the tile -> exercises in-kernel tail
    #    handling (no wrapper pad / crop)
    xt = jax.random.normal(k0, (2, 4, 15, 15), jnp.float32)
    check("tail", xt, w_res, w1, w2, 2e-4, 2e-4)

    # 4) large-channel config -> bf16 matmul path (looser tolerance vs f32 ref)
    kb, kwb = jax.random.split(kw)
    xb = jax.random.normal(kb, (2, 128, 16, 16), jnp.float32)
    _, w1b, w2b = make_weights(kwb, 128, 128)
    check("bf16", xb, None, w1b, w2b, 6e-2, 6e-2)

    print("KERNEL_OK")
</pallas_src>

<mosaic_0001>
module attributes {stable_mosaic.version = 11 : i64} {
  func.func @_resblock_kernel_proj(%arg0: i32, %arg1: i32, %arg2: memref<1x4x256xf32, #tpu.memory_space<vmem>>, %arg3: memref<8x4xf32, #tpu.memory_space<vmem>>, %arg4: memref<1x8x256xf32, #tpu.memory_space<vmem>>) attributes {dimension_semantics = [#tpu.dimension_semantics<parallel>, #tpu.dimension_semantics<parallel>], iteration_bounds = array<i64: 2, 1>, scalar_prefetch = 0 : i64, scratch_operands = 0 : i64, tpu.core_type = #tpu.core_type<tc>, window_params = [{transform_indices = @transform_0, window_bounds = array<i64: 1, 4, 256>}, {pipeline_mode = #tpu.pipeline_mode<synchronous>, transform_indices = @transform_1, window_bounds = array<i64: 8, 4>}, {transform_indices = @transform_2, window_bounds = array<i64: 1, 8, 256>}]} {
    %c0 = arith.constant 0 : index
    %c0_0 = arith.constant 0 : index
    %c0_1 = arith.constant 0 : index
    %0 = vector.load %arg2[%c0, %c0_0, %c0_1] : memref<1x4x256xf32, #tpu.memory_space<vmem>>, vector<1x4x256xf32>
    %1 = vector.shape_cast %0 : vector<1x4x256xf32> to vector<4x256xf32>
    %c0_2 = arith.constant 0 : index
    %c0_3 = arith.constant 0 : index
    %2 = vector.load %arg3[%c0_2, %c0_3] : memref<8x4xf32, #tpu.memory_space<vmem>>, vector<8x4xf32>
    %cst = arith.constant 2.000000e+01 : f32
    %3 = vector.broadcast %cst : f32 to vector<4x256xf32>
    %4 = arith.minimumf %1, %3 : vector<4x256xf32>
    %5 = math.exp %4 : vector<4x256xf32>
    %cst_4 = arith.constant 2.000000e+00 : f32
    %6 = vector.broadcast %cst_4 : f32 to vector<4x256xf32>
    %7 = arith.addf %5, %6 : vector<4x256xf32>
    %8 = arith.mulf %5, %7 : vector<4x256xf32>
    %cst_5 = arith.constant 2.000000e+00 : f32
    %9 = vector.broadcast %cst_5 : f32 to vector<4x256xf32>
    %10 = arith.addf %8, %9 : vector<4x256xf32>
    %11 = tpu.reciprocal %10 {approx = true} : vector<4x256xf32> -> vector<4x256xf32>
    %12 = arith.mulf %10, %11 : vector<4x256xf32>
    %cst_6 = arith.constant 2.000000e+00 : f32
    %13 = vector.broadcast %cst_6 : f32 to vector<4x256xf32>
    %14 = arith.subf %13, %12 : vector<4x256xf32>
    %15 = arith.mulf %11, %14 : vector<4x256xf32>
    %16 = arith.mulf %8, %15 : vector<4x256xf32>
    %17 = arith.mulf %1, %16 : vector<4x256xf32>
    %cst_7 = arith.constant dense<0.000000e+00> : vector<8x256xf32>
    %18 = tpu.matmul %2, %17, %cst_7 {dimension_numbers = #tpu.dot_dimension_numbers<[1], [0], [0], [1], [0, 0, 1, 1], [], []>} : vector<8x4xf32>, vector<4x256xf32>, vector<8x256xf32> -> vector<8x256xf32>
    %cst_8 = arith.constant 2.000000e+01 : f32
    %19 = vector.broadcast %cst_8 : f32 to vector<8x256xf32>
    %20 = arith.minimumf %18, %19 : vector<8x256xf32>
    %21 = math.exp %20 : vector<8x256xf32>
    %cst_9 = arith.constant 2.000000e+00 : f32
    %22 = vector.broadcast %cst_9 : f32 to vector<8x256xf32>
    %23 = arith.addf %21, %22 : vector<8x256xf32>
    %24 = arith.mulf %21, %23 : vector<8x256xf32>
    %cst_10 = arith.constant 2.000000e+00 : f32
    %25 = vector.broadcast %cst_10 : f32 to vector<8x256xf32>
    %26 = arith.addf %24, %25 : vector<8x256xf32>
    %27 = tpu.reciprocal %26 {approx = true} : vector<8x256xf32> -> vector<8x256xf32>
    %28 = arith.mulf %26, %27 : vector<8x256xf32>
    %cst_11 = arith.constant 2.000000e+00 : f32
    %29 = vector.broadcast %cst_11 : f32 to vector<8x256xf32>
    %30 = arith.subf %29, %28 : vector<8x256xf32>
    %31 = arith.mulf %27, %30 : vector<8x256xf32>
    %32 = arith.mulf %24, %31 : vector<8x256xf32>
    %33 = arith.mulf %18, %32 : vector<8x256xf32>
    %c0_12 = arith.constant 0 : index
    %c0_13 = arith.constant 0 : index
    %c0_14 = arith.constant 0 : index
    %34 = vector.load %arg4[%c0_12, %c0_13, %c0_14] : memref<1x8x256xf32, #tpu.memory_space<vmem>>, vector<1x8x256xf32>
    %35 = vector.shape_cast %34 : vector<1x8x256xf32> to vector<8x256xf32>
    %36 = vector.shape_cast %33 : vector<8x256xf32> to vector<1x8x256xf32>
    tpu.vector_store %arg4[%c0_12, %c0_13, %c0_14], %36 {strides = array<i32>} : memref<1x8x256xf32, #tpu.memory_space<vmem>>, vector<1x8x256xf32>,
    return
  }
  func.func @transform_0(%arg0: i32, %arg1: i32) -> (i32, i32, i32) {
    %c0_i32 = arith.constant 0 : i32
    %c0_i32_0 = arith.constant 0 : i32
    return %arg0, %c0_i32, %arg1 : i32, i32, i32
  }
  func.func @transform_1(%arg0: i32, %arg1: i32) -> (i32, i32) {
    %c0_i32 = arith.constant 0 : i32
    %c0_i32_0 = arith.constant 0 : i32
    %c0_i32_1 = arith.constant 0 : i32
    return %c0_i32, %c0_i32_0 : i32, i32
  }
  func.func @transform_2(%arg0: i32, %arg1: i32) -> (i32, i32, i32) {
    %c0_i32 = arith.constant 0 : i32
    %c0_i32_0 = arith.constant 0 : i32
    return %arg0, %c0_i32, %arg1 : i32, i32, i32
  }
}

</mosaic_0001>

<bundles_post_ra>
// kernel: tpu_custom_call.1
= control target key start
LH: loop header
LB: loop body
LE: loop exit
PB: predicated region body
PF: predicated region fallthrough
CT: control target
= control target key end

     0   :  { %7 = vsyncpa [#allocation3], 0  ;;  %s764_s0 = inlined_call_operand.hbm [shape: f32[2,4,256], index: 0, kind: input, shape index: {}]   ;;  %s765_s1 = inlined_call_operand.vmem [shape: f32[8,4], index: 1, kind: input, shape index: {}]   ;;  %s766_s2 = inlined_call_operand.hbm [shape: f32[2,8,256], index: 2, kind: output, shape index: {}]  }
   0x1   :  { %9 = vsyncpa [#allocation3 + $0x1], 0 }
   0x2   :  { %10 = vsyncpa [#allocation4], 0 }
   0x3   :  { %12 = vsyncpa [#allocation4 + $0x1], 0  ;;  %s626_s9 = smov 0   ;;  %s628_s10 = smov 0  }
   0x4   :  { %s630_s11 = smov 0   ;;  %s632_s12 = smov 0  }
   0x5   :  { %s634_s13 = smov 0   ;;  %s636_s14 = smov 0  }
   0x6 LB: > { %s403_s15 = sadd.s32 4294967295, %s606_s14   ;;  %s404_s16 = sadd.s32 4294967294, %s606_s14   ;;  %s606_s14 = sphi %s636_s14, %s18_s14   ;;  %s602_s13 = sphi %s634_s13, %s778_s13   ;;  %s598_s12 = sphi %s632_s12, %s777_s12   ;;  %s594_s11 = sphi %s630_s11, %s776_s11   ;;  %s590_s10 = sphi %s628_s10, %s775_s10   ;;  %s586_s9 = sphi %s626_s9, %s774_s9  }
   0x7   : > { %s30_s17 = sadd.s32 1, %s602_s13  ;;  %s39_s18 = sadd.s32 1, %s594_s11 }
   0x8   : > { %p32_p0 = scmp.ge.s32.totalorder %s30_s17, 2  ;;  %p46_p1 = scmp.ne.s32.totalorder %s594_s11, %s590_s10 }
   0x9   : > { %p47_p2 = scmp.eq.s32.totalorder %s606_s14, 0  ;;  %p52_p3 = scmp.ne.s32.totalorder %s590_s10, %s586_s9 }
   0xa   : > { %s780_s17 = smov (%p32_p0, %s30_s17), 0  ;;  %p53_p5 = scmp.eq.s32.totalorder %s403_s15, 0 }
   0xb   : > { %p667_p4 = por %p47_p2, %p46_p1  ;;  %s34_s20 = ssub.s32 %s602_s13, %s780_s17 }
   0xc   : > { %p99_p6 = scmp.eq.s32.totalorder %s403_s15, 1  ;;  %p37_p7 = scmp.eq.s32.totalorder %s34_s20, 0 }
   0xd   : > { %p673_p8 = por %p53_p5, %p52_p3  ;;  %p105_p10 = scmp.eq.s32.totalorder %s404_s16, 1 }
   0xe   : > { %p677_p9 = por %p99_p6, %p46_p1  ;;  %p435_p13 = scmp.lt.s32.totalorder %s606_s14, 2 }
   0xf   : > { %s682_s23 = scalar_select %p37_p7, %s594_s11, %s39_s18  }
  0x10   : > { %p684_p11 = por %p105_p10, %p52_p3  ;;  %s128_s25 = sand.u32 1, %s594_s11  }
  0x11   : > { %s407_s26 = sshll.u32 %s128_s25, 3  ;;  %s421_s27 = sshll.u32 %s602_s13, 7 }
  0x12   : > { %s770_s24 = scalar_select %p684_p11, 1, 0 }
  0x13   : > { %s140_s30 = scalar_lea.hbm %s764_s0, %s421_s27  ;;  %s132_s3 = scalar_lea.vmem [#allocation2], %s407_s26 }
  0x14   : > { %s142_s4 = sshll.u32 %s132_s3, 4  ;;  %p697_p0 = pnand %p435_p13, %p667_p4  ;;  %s143_s4 = int_to_ptr.vmem [resolvable:$true] %s142_s4 }
  0x15   : > { %p410_p1 = scmp.ge.s32.totalorder %s606_s14, 1  ;;  %p147_p2 = scmp.lt.s32.totalorder %s606_s14, 3 }
  0x16   : > { %s129_s6 = scalar_lea.sflag [#allocation3], %s128_s25  ;;  %p500_p3 = pneg %p697_p0 }
  0x17   : > { %s511_s7 = scalar_lea.vmem %s143_s4, 128  ;;  %s608_s8 = smov [#allocation2]  }
  0x18   : > { %p512_p5 = scmp.ne.s32.totalorder %s143_s4, %s511_s7  ;;  %s516_s15 = sshll.u32 %s608_s8, 4  ;;  %s517_s15 = int_to_ptr.vmem [resolvable:$false] %s516_s15 }
  0x19   : > { %s518_s16 = scalar_lea.vmem %s517_s15, 256  ;;  %p519_p10 = scmp.lt.s32.totalorder %s143_s4, %s517_s15 }
  0x1a   : > { %p514_p6 = pnand %p512_p5, %p500_p3  ;;  %p520_p12 = scmp.lt.s32.totalorder %s518_s16, %s511_s7 }
  0x1c   : > { %p515_p7 = pneg %p514_p6  ;;  %p521_p4 = por %p520_p12, %p519_p10 }
  0x1e   : > { %p522_p13 = pnand %p521_p4, %p515_p7 }
  0x20   : > { %525 = shalt.err (!%p522_p13)
}
  0x21   : > { %430 = dma.hbm_to_vmem [thread:$0]  (!%p697_p0), %s140_s30, 128, %s143_s4, %s129_s6  }
  0x22   : > { %p148_p11 = pnand %p410_p1, %p147_p2 }
  0x23   : > { %s712_s18 = sand.u32 (!%p148_p11), 1, %s590_s10  }
  0x24   : > { %151 = sbr.rel (%p148_p11) target bundleno = 351 (0x15f), region = 28  ;;  %s411_s19 = sshll.u32 (!%p148_p11), %s712_s18, 3 }
  0x25   : > { %s154_s20 = scalar_lea.sflag (!%p148_p11), [#allocation3], %s712_s18  ;;  %s157_s25 = scalar_lea.vmem (!%p148_p11), [#allocation2], %s411_s19 }
  0x29   : > { %577 = dma.done.wait (%p673_p8), %s154_s20, 128  }
  0x2a   : > { %579 = vsyncadd (%p673_p8), %s154_s20, 4294967168  ;;  %v609_v0 = vmov 0.0   ;;  %v180_v1 = vld [vmem:[%s157_s25] sm:$0xff]  ;;  %vm200_vm0 = vcmask 1043456   ;;  %vm196_vm1 = vcmask 31744   ;;  %s412_s27 = sshll.u32 %s712_s18, 4 }
  0x2b   : > { %269 = vmatprep.mubr.f32.mxu0 %v609_v0  ;;  %v182_v2 = vmin.f32 %v180_v1, 20.0  ;;  %v181_v15 = vld [vmem:[%s765_s1] sm:$0xff]  ;;  %s422_s28 = sshll.u32 %s598_s12, 8  ;;  %s177_s29 = scalar_lea.vmem [#allocation5], %s412_s27 }
  0x2c   : > { %s319_s30 = sshll.u32 %s177_s29, 4  ;;  %s317_s5 = scalar_lea.hbm %s766_s2, %s422_s28  ;;  %s320_s30 = int_to_ptr.vmem [resolvable:$true] %s319_s30 }
  0x2d   : > { %v183_v3 = vmul.f32 1.442695, %v182_v2  ;;  %s303_s6 = scalar_lea.sflag [#allocation4], %s712_s18  ;;  %s526_s7 = scalar_lea.vmem %s320_s30, 256 }
  0x2e   : > { %p527_p8 = scmp.ne.s32.totalorder %s320_s30, %s526_s7  ;;  %s610_s8 = smov [#allocation5]  }
  0x2f   : > { %486 = vpow2.f32 %v183_v3  ;;  %s530_s12 = sshll.u32 %s610_s8, 4  ;;  %s531_s12 = int_to_ptr.vmem [resolvable:$false] %s530_s12 }
  0x30   : > { %p528_p11 = pnand %p527_p8, %p677_p9  ;;  %s532_s15 = scalar_lea.vmem %s531_s12, 512 }
  0x31   : > { %p533_p0 = scmp.lt.s32.totalorder %s320_s30, %s531_s12  ;;  %p534_p1 = scmp.lt.s32.totalorder %s532_s15, %s526_s7 }
  0x32   : > { %p529_p12 = pneg %p528_p11 }
  0x33   : > { %p535_p2 = por %p534_p1, %p533_p0 }
  0x35   : > { %p536_p3 = pnand %p535_p2, %p529_p12 }
  0x3c   : > { %v487_v4 = vpop.eup %486 }
  0x3d   : > { %v185_v5 = vadd.f32 2.0, %v487_v4 }
  0x3f   : > { %v186_v6 = vmul.f32 %v487_v4, %v185_v5 }
  0x41   : > { %v187_v7 = vadd.f32 2.0, %v186_v6 }
  0x43   : > { %488 = vrcp.f32 %v187_v7 }
  0x50   : > { %v489_v8 = vpop.eup %488 }
  0x51   : > { %v189_v9 = vmul.f32 %v489_v8, %v187_v7 }
  0x53   : > { %v190_v10 = vsub.f32 2.0, %v189_v9 }
  0x55   : > { %v191_v11 = vmul.f32 %v489_v8, %v190_v10 }
  0x57   : > { %v192_v12 = vmul.f32 %v191_v11, %v186_v6 }
  0x59   : > { %v193_v13 = vmul.f32 %v192_v12, %v180_v1 }
  0x5b   : > { %v195_v14 = vcombine.high %v193_v13, %v193_v13 }
  0x5d   : > { %413 = vmatprep.subr.msk.mxu0 %vm200_vm0, %v195_v14 }
  0x5e   : > { %414 = vmatpush1.msk.msra.mxu0 %vm200_vm0, %v193_v13 }
  0x5f   : > { %415 = vmatmul.mubr.msk.f32.vlgmr.msra.gmra.mxu0 %vm196_vm1, %v181_v15 }
 0x11f   : > { %v271_v16 = vpop.f32.mrf.mxu0 }
 0x120   : > { %v276_v17 = vmin.f32 %v271_v16, 20.0 }
 0x121   : > { %v273_v18 = vpop.f32.mrf.mxu0 }
 0x122   : > { %v278_v19 = vmul.f32 1.442695, %v276_v17  ;;  %v277_v20 = vmin.f32 %v273_v18, 20.0 }
 0x124   : > { %490 = vpow2.f32 %v278_v19  ;;  %v280_v21 = vmul.f32 1.442695, %v277_v20 }
 0x126   : > { %492 = vpow2.f32 %v280_v21 }
 0x131   : > { %v491_v22 = vpop.eup %490 }
 0x132   : > { %v282_v23 = vadd.f32 2.0, %v491_v22 }
 0x133   : > { %v493_v24 = vpop.eup %492 }
 0x134   : > { %v284_v25 = vmul.f32 %v491_v22, %v282_v23  ;;  %v283_v26 = vadd.f32 2.0, %v493_v24 }
 0x136   : > { %v286_v27 = vadd.f32 2.0, %v284_v25  ;;  %v285_v28 = vmul.f32 %v493_v24, %v283_v26 }
 0x138   : > { %494 = vrcp.f32 %v286_v27  ;;  %v287_v29 = vadd.f32 2.0, %v285_v28 }
 0x13a   : > { %496 = vrcp.f32 %v287_v29 }
 0x145   : > { %v495_v30 = vpop.eup %494 }
 0x146   : > { %v290_v31 = vmul.f32 %v495_v30, %v286_v27 }
 0x147   : > { %v497_v32 = vpop.eup %496 }
 0x148   : > { %v292_v33 = vsub.f32 2.0, %v290_v31  ;;  %v291_v34 = vmul.f32 %v497_v32, %v287_v29 }
 0x14a   : > { %v294_v35 = vmul.f32 %v495_v30, %v292_v33  ;;  %v293_v36 = vsub.f32 2.0, %v291_v34 }
 0x14c   : > { %v296_v37 = vmul.f32 %v294_v35, %v284_v25  ;;  %v295_v38 = vmul.f32 %v497_v32, %v293_v36 }
 0x14e   : > { %v298_v39 = vmul.f32 %v296_v37, %v271_v16  ;;  %v297_v40 = vmul.f32 %v295_v38, %v285_v28 }
 0x150   : > { %300 = vst [vmem:[%s177_s29] sm:$0xff] %v298_v39  ;;  %v299_v41 = vmul.f32 %v297_v40, %v273_v18 }
 0x152   : > { %301 = vst [vmem:[%s177_s29 + $0x8] sm:$0xff] %v299_v41 }
 0x153   : > { %539 = shalt.err (!%p536_p3)
}
 0x154   : > { %s540_s16 = scalar_lea.hbm %s317_s5, 256  ;;  %s544_s20 = scalar_lea.hbm %s766_s2, 512 }
 0x155   : > { %p541_p5 = scmp.ne.s32.totalorder %s317_s5, %s540_s16  ;;  %p545_p10 = scmp.lt.s32.totalorder %s317_s5, %s766_s2 }
 0x156   : > { %p546_p4 = scmp.lt.s32.totalorder %s544_s20, %s540_s16 }
 0x157   : > { %p542_p6 = pnand %p541_p5, %p677_p9 }
 0x158   : > { %p547_p13 = por %p546_p4, %p545_p10 }
 0x159   : > { %p543_p7 = pneg %p542_p6 }
 0x15b   : > { %p548_p8 = pnand %p547_p13, %p543_p7 }
 0x15d   : > { %551 = shalt.err (!%p548_p8)
}
 0x15e   : > { %425 = dma.vmem_to_hbm [thread:$0]  (%p677_p9), %s320_s30, 256, %s317_s5, %s303_s6  }
 0x15f PF: > { %s331_s26 = sand.u32 1, %s586_s9   ;;  %p772_p11 = scmp.ne.s32.totalorder %s770_s24, 0 }
 0x160   : > { %p773_p12 = scmp.ge.s32.totalorder %s606_s14, 2  ;;  %s332_s27 = scalar_lea.sflag [#allocation4], %s331_s26 }
 0x162   : > { %p432_p0 = pnand %p773_p12, %p772_p11 }
 0x164   : > { %p433_p1 = pneg %p432_p0 }
 0x166   : > { %581 = dma.done.wait (%p433_p1), %s332_s27, 256  }
 0x167   : > { %583 = vsyncadd (%p433_p1), %s332_s27, 4294967040  ;;  %s18_s14 = sadd.s32 1, %s606_s14   ;;  %s774_s9 = smov %s590_s10 }
 0x168   : > { %p15_p2 = scmp.ge.s32.totalorder %s18_s14, 4   ;;  %s775_s10 = smov %s594_s11 }
 0x169   : > { %s776_s11 = smov %s682_s23  ;;  %s777_s12 = smov %s602_s13 }
 0x16a   : > { %s778_s13 = smov %s780_s17  ;;  %17 = sbr.rel (!%p15_p2) target bundleno = 6 (0x6), region = 73 }
 0x16f   :  { %337 = vsyncpa [#allocation3], 1 }
 0x170   :  { %339 = vsyncpa [#allocation3 + $0x1], 1 }
 0x171   :  { %340 = vsyncpa [#allocation4], 1 }
 0x172   :  { %342 = vsyncpa [#allocation4 + $0x1], 1 }

</bundles_post_ra>
